<compile_context>
chip_gen: v6e
topology: v6e:2x2x1
jax: 0.10.0
libtpu: 0.0.40
codegen_flags: <defaults>
</compile_context>

<pallas_src>
import jax
import jax.numpy as jnp
from jax.experimental import pallas as pl
from jax.experimental.pallas import tpu as pltpu


def _gated_attention_kernel(x_ref, wv_ref, bv_ref, wu_ref, bu_ref,
                            ww_ref, bw_ref, o_ref):
    # x_ref:  (TM, L)   VMEM, pipelined per grid step
    # wv_ref: (L, Dp)   VMEM, resident     bv_ref: (1, Dp)
    # wu_ref: (L, Dp)   VMEM, resident     bu_ref: (1, Dp)
    # ww_ref: (Dp, Kp)  VMEM, resident     bw_ref: (1, Kp)
    # o_ref:  (TM, Kp)  VMEM
    x = x_ref[...]
    hv = jnp.dot(x, wv_ref[...], preferred_element_type=jnp.float32) + bv_ref[...]
    hu = jnp.dot(x, wu_ref[...], preferred_element_type=jnp.float32) + bu_ref[...]
    gated = jnp.tanh(hv) * jax.nn.sigmoid(hu)                  # (TM, Dp)
    logits = jnp.dot(gated, ww_ref[...],
                     preferred_element_type=jnp.float32) + bw_ref[...]
    o_ref[...] = logits.astype(o_ref.dtype)                    # (TM, Kp)


def _round_up(x, m):
    return ((x + m - 1) // m) * m


def attention_gated(x, wv, bv, wu, bu, ww, bw, is_norm=True, tile_m=256):
    """x: [N, L]; wv/wu: [D, L]; bv/bu: [D]; ww: [K, D]; bw: [K] -> [K, N]."""
    N, L = x.shape
    D = wv.shape[0]
    K = ww.shape[0]
    dtype = x.dtype

    LANE = 128
    Dp = _round_up(D, LANE)            # lane-dense intermediates
    Kp = _round_up(K, LANE)            # lane-dense output stores

    TM = min(tile_m, _round_up(N, 8))  # sublane-aligned batch tile
    Np = _round_up(N, TM)

    # Pad the instance dim up to a multiple of TM; padded rows are sliced off
    # before the softmax so they never affect the result.
    x_p = x if Np == N else jnp.pad(x, ((0, Np - N), (0, 0)))

    # Padded, pre-transposed weights / biases (tiny one-time glue tensors).
    wv_t = jnp.zeros((L, Dp), dtype).at[:, :D].set(wv.T)
    wu_t = jnp.zeros((L, Dp), dtype).at[:, :D].set(wu.T)
    ww_t = jnp.zeros((Dp, Kp), dtype).at[:D, :K].set(ww.T)
    bv_p = jnp.zeros((1, Dp), dtype).at[0, :D].set(bv)
    bu_p = jnp.zeros((1, Dp), dtype).at[0, :D].set(bu)
    bw_p = jnp.zeros((1, Kp), dtype).at[0, :K].set(bw)

    logits = pl.pallas_call(
        _gated_attention_kernel,
        out_shape=jax.ShapeDtypeStruct((Np, Kp), dtype),
        grid_spec=pl.GridSpec(
            grid=(Np // TM,),
            in_specs=[
                pl.BlockSpec((TM, L), lambda i: (i, 0)),    # x tile (pipelined)
                pl.BlockSpec((L, Dp), lambda i: (0, 0)),    # Wv.T  (resident)
                pl.BlockSpec((1, Dp), lambda i: (0, 0)),    # bv
                pl.BlockSpec((L, Dp), lambda i: (0, 0)),    # Wu.T
                pl.BlockSpec((1, Dp), lambda i: (0, 0)),    # bu
                pl.BlockSpec((Dp, Kp), lambda i: (0, 0)),   # Ww.T
                pl.BlockSpec((1, Kp), lambda i: (0, 0)),    # bw
            ],
            out_specs=pl.BlockSpec((TM, Kp), lambda i: (i, 0)),
        ),
        compiler_params=pltpu.CompilerParams(
            dimension_semantics=("parallel",)),
    )(x_p, wv_t, bv_p, wu_t, bu_p, ww_t, bw_p)

    A = logits[:N, :K].T                        # [K, N]
    if is_norm:
        # Softmax over the full instance axis (crosses all grid tiles);
        # done on the tiny [K, N] array in the wrapper.
        A = jax.nn.softmax(A, axis=1)
    return A


if __name__ == "__main__":
    key = jax.random.PRNGKey(0)
    k_x, k_wv, k_bv, k_wu, k_bu, k_ww, k_bw = jax.random.split(key, 7)

    # Small bag: 16 instances, module defaults L=512, D=32, K=1.
    N, L, D, K = 16, 512, 32, 1

    x = jax.random.normal(k_x, (N, L), dtype=jnp.float32)

    # PyTorch nn.Linear-style init: U(-1/sqrt(fan_in), 1/sqrt(fan_in))
    bL = 1.0 / jnp.sqrt(jnp.float32(L))
    bD = 1.0 / jnp.sqrt(jnp.float32(D))
    wv = jax.random.uniform(k_wv, (D, L), jnp.float32, -bL, bL)
    bv = jax.random.uniform(k_bv, (D,), jnp.float32, -bL, bL)
    wu = jax.random.uniform(k_wu, (D, L), jnp.float32, -bL, bL)
    bu = jax.random.uniform(k_bu, (D,), jnp.float32, -bL, bL)
    ww = jax.random.uniform(k_ww, (K, D), jnp.float32, -bD, bD)
    bw = jax.random.uniform(k_bw, (K,), jnp.float32, -bD, bD)

    out = attention_gated(x, wv, bv, wu, bu, ww, bw, is_norm=True)
    jax.block_until_ready(out)

    # Plain-JAX reference (full-precision matmuls).
    hp = jax.lax.Precision.HIGHEST
    av = jnp.tanh(jnp.dot(x, wv.T, precision=hp) + bv)
    au = jax.nn.sigmoid(jnp.dot(x, wu.T, precision=hp) + bu)
    a = jnp.dot(av * au, ww.T, precision=hp) + bw
    ref = jax.nn.softmax(a.T, axis=1)

    assert out.shape == (K, N)
    assert jnp.allclose(out, ref, atol=1e-3, rtol=1e-3), \
        float(jnp.max(jnp.abs(out - ref)))

    print("KERNEL_OK")
</pallas_src>

<mosaic_0001>
module attributes {stable_mosaic.version = 11 : i64} {
  func.func @_gated_attention_kernel(%arg0: i32, %arg1: memref<16x512xf32, #tpu.memory_space<vmem>>, %arg2: memref<512x128xf32, #tpu.memory_space<vmem>>, %arg3: memref<1x128xf32, #tpu.memory_space<vmem>>, %arg4: memref<512x128xf32, #tpu.memory_space<vmem>>, %arg5: memref<1x128xf32, #tpu.memory_space<vmem>>, %arg6: memref<128x128xf32, #tpu.memory_space<vmem>>, %arg7: memref<1x128xf32, #tpu.memory_space<vmem>>, %arg8: memref<16x128xf32, #tpu.memory_space<vmem>>) attributes {dimension_semantics = [#tpu.dimension_semantics<parallel>], iteration_bounds = array<i64: 1>, scalar_prefetch = 0 : i64, scratch_operands = 0 : i64, tpu.core_type = #tpu.core_type<tc>, window_params = [{transform_indices = @transform_0, window_bounds = array<i64: 16, 512>}, {pipeline_mode = #tpu.pipeline_mode<synchronous>, transform_indices = @transform_1, window_bounds = array<i64: 512, 128>}, {pipeline_mode = #tpu.pipeline_mode<synchronous>, transform_indices = @transform_2, window_bounds = array<i64: 1, 128>}, {pipeline_mode = #tpu.pipeline_mode<synchronous>, transform_indices = @transform_3, window_bounds = array<i64: 512, 128>}, {pipeline_mode = #tpu.pipeline_mode<synchronous>, transform_indices = @transform_4, window_bounds = array<i64: 1, 128>}, {pipeline_mode = #tpu.pipeline_mode<synchronous>, transform_indices = @transform_5, window_bounds = array<i64: 128, 128>}, {pipeline_mode = #tpu.pipeline_mode<synchronous>, transform_indices = @transform_6, window_bounds = array<i64: 1, 128>}, {transform_indices = @transform_7, window_bounds = array<i64: 16, 128>}]} {
    %c0 = arith.constant 0 : index
    %c0_0 = arith.constant 0 : index
    %0 = vector.load %arg1[%c0, %c0_0] : memref<16x512xf32, #tpu.memory_space<vmem>>, vector<16x512xf32>
    %c0_1 = arith.constant 0 : index
    %c0_2 = arith.constant 0 : index
    %1 = vector.load %arg2[%c0_1, %c0_2] : memref<512x128xf32, #tpu.memory_space<vmem>>, vector<512x128xf32>
    %cst = arith.constant dense<0.000000e+00> : vector<16x128xf32>
    %2 = tpu.matmul %0, %1, %cst {dimension_numbers = #tpu.dot_dimension_numbers<[1], [0], [0], [1], [0, 0, 1, 1], [], []>} : vector<16x512xf32>, vector<512x128xf32>, vector<16x128xf32> -> vector<16x128xf32>
    %c0_3 = arith.constant 0 : index
    %c0_4 = arith.constant 0 : index
    %3 = vector.load %arg3[%c0_3, %c0_4] : memref<1x128xf32, #tpu.memory_space<vmem>>, vector<1x128xf32>
    %4 = vector.broadcast %3 : vector<1x128xf32> to vector<16x128xf32>
    %5 = arith.addf %2, %4 : vector<16x128xf32>
    %c0_5 = arith.constant 0 : index
    %c0_6 = arith.constant 0 : index
    %6 = vector.load %arg4[%c0_5, %c0_6] : memref<512x128xf32, #tpu.memory_space<vmem>>, vector<512x128xf32>
    %cst_7 = arith.constant dense<0.000000e+00> : vector<16x128xf32>
    %7 = tpu.matmul %0, %6, %cst_7 {dimension_numbers = #tpu.dot_dimension_numbers<[1], [0], [0], [1], [0, 0, 1, 1], [], []>} : vector<16x512xf32>, vector<512x128xf32>, vector<16x128xf32> -> vector<16x128xf32>
    %c0_8 = arith.constant 0 : index
    %c0_9 = arith.constant 0 : index
    %8 = vector.load %arg5[%c0_8, %c0_9] : memref<1x128xf32, #tpu.memory_space<vmem>>, vector<1x128xf32>
    %9 = vector.broadcast %8 : vector<1x128xf32> to vector<16x128xf32>
    %10 = arith.addf %7, %9 : vector<16x128xf32>
    %11 = math.tanh %5 : vector<16x128xf32>
    %12 = arith.negf %10 : vector<16x128xf32>
    %13 = math.exp %12 : vector<16x128xf32>
    %cst_10 = arith.constant 1.000000e+00 : f32
    %14 = vector.broadcast %cst_10 : f32 to vector<16x128xf32>
    %15 = arith.addf %14, %13 : vector<16x128xf32>
    %16 = arith.divf %14, %15 : vector<16x128xf32>
    %17 = arith.mulf %11, %16 : vector<16x128xf32>
    %c0_11 = arith.constant 0 : index
    %c0_12 = arith.constant 0 : index
    %18 = vector.load %arg6[%c0_11, %c0_12] : memref<128x128xf32, #tpu.memory_space<vmem>>, vector<128x128xf32>
    %cst_13 = arith.constant dense<0.000000e+00> : vector<16x128xf32>
    %19 = tpu.matmul %17, %18, %cst_13 {dimension_numbers = #tpu.dot_dimension_numbers<[1], [0], [0], [1], [0, 0, 1, 1], [], []>} : vector<16x128xf32>, vector<128x128xf32>, vector<16x128xf32> -> vector<16x128xf32>
    %c0_14 = arith.constant 0 : index
    %c0_15 = arith.constant 0 : index
    %20 = vector.load %arg7[%c0_14, %c0_15] : memref<1x128xf32, #tpu.memory_space<vmem>>, vector<1x128xf32>
    %21 = vector.broadcast %20 : vector<1x128xf32> to vector<16x128xf32>
    %22 = arith.addf %19, %21 : vector<16x128xf32>
    %c0_16 = arith.constant 0 : index
    %c0_17 = arith.constant 0 : index
    %23 = vector.load %arg8[%c0_16, %c0_17] : memref<16x128xf32, #tpu.memory_space<vmem>>, vector<16x128xf32>
    tpu.vector_store %arg8[%c0_16, %c0_17], %22 {strides = array<i32>} : memref<16x128xf32, #tpu.memory_space<vmem>>, vector<16x128xf32>,
    return
  }
  func.func @transform_0(%arg0: i32) -> (i32, i32) {
    %c0_i32 = arith.constant 0 : i32
    %c0_i32_0 = arith.constant 0 : i32
    return %arg0, %c0_i32 : i32, i32
  }
  func.func @transform_1(%arg0: i32) -> (i32, i32) {
    %c0_i32 = arith.constant 0 : i32
    %c0_i32_0 = arith.constant 0 : i32
    %c0_i32_1 = arith.constant 0 : i32
    return %c0_i32, %c0_i32_0 : i32, i32
  }
  func.func @transform_2(%arg0: i32) -> (i32, i32) {
    %c0_i32 = arith.constant 0 : i32
    %c0_i32_0 = arith.constant 0 : i32
    %c0_i32_1 = arith.constant 0 : i32
    return %c0_i32, %c0_i32_0 : i32, i32
  }
  func.func @transform_3(%arg0: i32) -> (i32, i32) {
    %c0_i32 = arith.constant 0 : i32
    %c0_i32_0 = arith.constant 0 : i32
    %c0_i32_1 = arith.constant 0 : i32
    return %c0_i32, %c0_i32_0 : i32, i32
  }
  func.func @transform_4(%arg0: i32) -> (i32, i32) {
    %c0_i32 = arith.constant 0 : i32
    %c0_i32_0 = arith.constant 0 : i32
    %c0_i32_1 = arith.constant 0 : i32
    return %c0_i32, %c0_i32_0 : i32, i32
  }
  func.func @transform_5(%arg0: i32) -> (i32, i32) {
    %c0_i32 = arith.constant 0 : i32
    %c0_i32_0 = arith.constant 0 : i32
    %c0_i32_1 = arith.constant 0 : i32
    return %c0_i32, %c0_i32_0 : i32, i32
  }
  func.func @transform_6(%arg0: i32) -> (i32, i32) {
    %c0_i32 = arith.constant 0 : i32
    %c0_i32_0 = arith.constant 0 : i32
    %c0_i32_1 = arith.constant 0 : i32
    return %c0_i32, %c0_i32_0 : i32, i32
  }
  func.func @transform_7(%arg0: i32) -> (i32, i32) {
    %c0_i32 = arith.constant 0 : i32
    %c0_i32_0 = arith.constant 0 : i32
    return %arg0, %c0_i32 : i32, i32
  }
}

</mosaic_0001>

<bundles_post_ra>
// kernel: tpu_custom_call.1
= control target key start
LH: loop header
LB: loop body
LE: loop exit
PB: predicated region body
PF: predicated region fallthrough
CT: control target
= control target key end

     0   :  { %12 = vsyncpa [#allocation3], 0  ;;  %s1107_s0 = inlined_call_operand.hbm [shape: f32[16,512], index: 0, kind: input, shape index: {}]   ;;  %s1108_s1 = inlined_call_operand.hbm [shape: f32[512,128], index: 1, kind: input, shape index: {}]   ;;  %s1109_s2 = inlined_call_operand.vmem [shape: f32[1,128], index: 2, kind: input, shape index: {}]   ;;  %s1110_s3 = inlined_call_operand.hbm [shape: f32[512,128], index: 3, kind: input, shape index: {}]   ;;  %s1111_s4 = inlined_call_operand.vmem [shape: f32[1,128], index: 4, kind: input, shape index: {}]   ;;  %s1112_s5 = inlined_call_operand.hbm [shape: f32[128,128], index: 5, kind: input, shape index: {}]   ;;  %s1113_s6 = inlined_call_operand.vmem [shape: f32[1,128], index: 6, kind: input, shape index: {}]   ;;  %s1114_s7 = inlined_call_operand.hbm [shape: f32[16,128], index: 7, kind: output, shape index: {}]  }
   0x1   :  { %13 = vsyncpa [#allocation6], 0 }
   0x2   :  { %14 = vsyncpa [#allocation9], 0 }
   0x3   :  { %15 = vsyncpa [#allocation4], 0  ;;  %s1006_s24 = smov [#allocation5]  }
   0x4   :  { %s33_s25 = sshll.u32 %s1006_s24, 4  ;;  %s34_s25 = int_to_ptr.vmem [resolvable:$true] %s33_s25 }
   0x5   :  { %s906_s26 = scalar_lea.vmem %s34_s25, 8192  ;;  %p911_p1 = scmp.lt.s32.totalorder %s34_s25, %s34_s25 }
   0x6   :  { %p907_p0 = scmp.ne.s32.totalorder %s34_s25, %s906_s26  ;;  %p912_p2 = scmp.lt.s32.totalorder %s906_s26, %s906_s26 }
   0x8   :  { %p913_p3 = por %p912_p2, %p911_p1 }
   0xa   :  { %p914_p4 = pnand %p913_p3, %p907_p0 }
   0xc   :  { %917 = shalt.err (!%p914_p4)
}
   0xd   :  { %s1007_s27 = smov 128   ;;  %s1008_s28 = smov 8  }
   0xe   :  { %39 = dma.hbm_to_vmem [thread:$0]  %s1108_s1, 8192, %s34_s25, [#allocation6], %s1007_s27, %s1007_s27, %s1008_s28  }
   0xf   :  { %s1009_s8 = smov [#allocation2]  }
  0x10   :  { %s21_s9 = sshll.u32 %s1009_s8, 4  ;;  %s22_s9 = int_to_ptr.vmem [resolvable:$true] %s21_s9 }
  0x11   :  { %s926_s10 = scalar_lea.vmem %s22_s9, 1024  ;;  %p931_p6 = scmp.lt.s32.totalorder %s22_s9, %s22_s9 }
  0x12   :  { %p927_p5 = scmp.ne.s32.totalorder %s22_s9, %s926_s10  ;;  %p932_p7 = scmp.lt.s32.totalorder %s926_s10, %s926_s10 }
  0x14   :  { %p933_p8 = por %p932_p7, %p931_p6 }
  0x16   :  { %p934_p9 = pnand %p933_p8, %p927_p5 }
  0x18   :  { %937 = shalt.err (!%p934_p9)
}
  0x19   :  { %s1010_s11 = smov 512   ;;  %s1011_s12 = smov 32  }
  0x1a   :  { %27 = dma.hbm_to_vmem [thread:$0]  %s1107_s0, 1024, %s22_s9, [#allocation3], %s1010_s11, %s1010_s11, %s1011_s12  }
  0x1b   :  { %s1012_s15 = smov [#allocation7]   ;;  %s1013_s17 = smov [#allocation8]  }
  0x1c   :  { %s47_s16 = sshll.u32 %s1012_s15, 4  ;;  %s61_s1 = sshll.u32 %s1013_s17, 4  ;;  %s48_s16 = int_to_ptr.vmem [resolvable:$true] %s47_s16  ;;  %s62_s1 = int_to_ptr.vmem [resolvable:$true] %s61_s1 }
  0x1d   :  { %s946_s18 = scalar_lea.vmem %s48_s16, 8192  ;;  %p951_p11 = scmp.lt.s32.totalorder %s48_s16, %s48_s16 }
  0x1e   :  { %p947_p10 = scmp.ne.s32.totalorder %s48_s16, %s946_s18  ;;  %p952_p12 = scmp.lt.s32.totalorder %s946_s18, %s946_s18 }
  0x20   :  { %p953_p13 = por %p952_p12, %p951_p11 }
  0x22   :  { %p954_p0 = pnand %p953_p13, %p947_p10 }
  0x24   :  { %957 = shalt.err (!%p954_p0)
}
  0x25   :  { %53 = dma.hbm_to_vmem [thread:$0]  %s1110_s3, 8192, %s48_s16, [#allocation6], %s1007_s27, %s1007_s27, %s1008_s28  }
  0x26   :  { %s966_s0 = scalar_lea.vmem %s62_s1, 2048  ;;  %p971_p2 = scmp.lt.s32.totalorder %s62_s1, %s62_s1 }
  0x27   :  { %p967_p1 = scmp.ne.s32.totalorder %s62_s1, %s966_s0  ;;  %p972_p3 = scmp.lt.s32.totalorder %s966_s0, %s966_s0 }
  0x29   :  { %p973_p4 = por %p972_p3, %p971_p2 }
  0x2b   :  { %p974_p5 = pnand %p973_p4, %p967_p1 }
  0x2d   :  { %977 = shalt.err (!%p974_p5)
}
  0x2e   :  { %67 = dma.hbm_to_vmem [thread:$0]  %s1112_s5, 2048, %s62_s1, [#allocation9], %s1007_s27, %s1007_s27, %s1008_s28  }
  0x2f   :  { %998 = dma.done.wait [#allocation3], 1024  }
  0x30   :  { %999 = vsyncadd [#allocation3], 4294966272 }
  0x31   :  { %1000 = dma.done.wait [#allocation6], 16384  }
  0x32   :  { %1001 = vsyncadd [#allocation6], 4294950912 }
  0x33   :  { %1002 = dma.done.wait [#allocation9], 2048  }
  0x34   :  { %1003 = vsyncadd [#allocation9], 4294965248  ;;  %v121_v0 = vld [vmem:[#allocation5 + $0xf8] sm:$0xff]  ;;  %v120_v4 = vld [vmem:[#allocation5 + $0xf0] sm:$0xff]  ;;  %s1014_s25 = smov [#allocation10]  }
  0x35   :  { %v153_v1 = vld [vmem:[#allocation5 + $0x1f8] sm:$0xff]  ;;  %672 = vmatprep.subr.mxu0 %v121_v0  ;;  %v152_v5 = vld [vmem:[#allocation5 + $0x1f0] sm:$0xff]  ;;  %v119_v8 = vld [vmem:[#allocation5 + $0xe8] sm:$0xff]  ;;  %s653_s26 = sshll.u32 %s1014_s25, 4  ;;  %s654_s26 = int_to_ptr.vmem [resolvable:$true] %s653_s26 }
  0x36   :  { %v105_v2 = vld [vmem:[#allocation5 + $0x78] sm:$0xff]  ;;  %710 = vmatprep.subr.mxu1 %v153_v1  ;;  %v104_v6 = vld [vmem:[#allocation5 + $0x70] sm:$0xff]  ;;  %v151_v9 = vld [vmem:[#allocation5 + $0x1e8] sm:$0xff]  ;;  %s978_s29 = scalar_lea.vmem %s654_s26, 256  ;;  %p983_p7 = scmp.lt.s32.totalorder %s654_s26, %s654_s26 }
  0x37   :  { %v137_v3 = vld [vmem:[#allocation5 + $0x178] sm:$0xff]  ;;  %673 = vmatpush3.msra.mxu0 %v105_v2  ;;  %v136_v7 = vld [vmem:[#allocation5 + $0x170] sm:$0xff]  ;;  %v103_v10 = vld [vmem:[#allocation5 + $0x68] sm:$0xff]  ;;  %p979_p6 = scmp.ne.s32.totalorder %s654_s26, %s978_s29  ;;  %p984_p8 = scmp.lt.s32.totalorder %s978_s29, %s978_s29 }
  0x38   :  { %711 = vmatpush3.msra.mxu1 %v137_v3  ;;  %674 = vmatprep.subr.mxu0 %v120_v4  ;;  %v135_v11 = vld [vmem:[#allocation5 + $0x168] sm:$0xff]  ;;  %v118_v12 = vld [vmem:[#allocation5 + $0xe0] sm:$0xff]  ;;  %v117_v16 = vld [vmem:[#allocation5 + $0xd8] sm:$0xff] }
  0x39   :  { %712 = vmatprep.subr.mxu1 %v152_v5  ;;  %675 = vmatpush3.msra.mxu0 %v104_v6  ;;  %v150_v13 = vld [vmem:[#allocation5 + $0x1e0] sm:$0xff]  ;;  %v149_v17 = vld [vmem:[#allocation5 + $0x1d8] sm:$0xff]  ;;  %v116_v20 = vld [vmem:[#allocation5 + $0xd0] sm:$0xff]  ;;  %p985_p9 = por %p984_p8, %p983_p7 }
  0x3a   :  { %713 = vmatpush3.msra.mxu1 %v136_v7  ;;  %676 = vmatprep.subr.mxu0 %v119_v8  ;;  %v102_v14 = vld [vmem:[#allocation5 + $0x60] sm:$0xff]  ;;  %v101_v18 = vld [vmem:[#allocation5 + $0x58] sm:$0xff]  ;;  %v148_v21 = vld [vmem:[#allocation5 + $0x1d0] sm:$0xff] }
  0x3b   :  { %714 = vmatprep.subr.mxu1 %v151_v9  ;;  %v134_v15 = vld [vmem:[#allocation5 + $0x160] sm:$0xff]  ;;  %677 = vmatpush3.msra.mxu0 %v103_v10  ;;  %v133_v19 = vld [vmem:[#allocation5 + $0x158] sm:$0xff]  ;;  %v100_v22 = vld [vmem:[#allocation5 + $0x50] sm:$0xff]  ;;  %p986_p10 = pnand %p985_p9, %p979_p6 }
  0x3c   :  { %715 = vmatpush3.msra.mxu1 %v135_v11  ;;  %678 = vmatprep.subr.mxu0 %v118_v12  ;;  %v132_v23 = vld [vmem:[#allocation5 + $0x150] sm:$0xff]  ;;  %v115_v24 = vld [vmem:[#allocation5 + $0xc8] sm:$0xff]  ;;  %v114_v28 = vld [vmem:[#allocation5 + $0xc0] sm:$0xff] }
  0x3d   :  { %716 = vmatprep.subr.mxu1 %v150_v13  ;;  %679 = vmatpush3.msra.mxu0 %v102_v14  ;;  %v147_v25 = vld [vmem:[#allocation5 + $0x1c8] sm:$0xff]  ;;  %v146_v29 = vld [vmem:[#allocation5 + $0x1c0] sm:$0xff]  ;;  %v113_v32 = vld [vmem:[#allocation5 + $0xb8] sm:$0xff] }
  0x3e   :  { %717 = vmatpush3.msra.mxu1 %v134_v15  ;;  %680 = vmatprep.subr.mxu0 %v117_v16  ;;  %v99_v26 = vld [vmem:[#allocation5 + $0x48] sm:$0xff]  ;;  %v98_v30 = vld [vmem:[#allocation5 + $0x40] sm:$0xff]  ;;  %v145_v33 = vld [vmem:[#allocation5 + $0x1b8] sm:$0xff] }
  0x3f   :  { %718 = vmatprep.subr.mxu1 %v149_v17  ;;  %681 = vmatpush3.msra.mxu0 %v101_v18  ;;  %v131_v27 = vld [vmem:[#allocation5 + $0x148] sm:$0xff]  ;;  %v130_v31 = vld [vmem:[#allocation5 + $0x140] sm:$0xff]  ;;  %v97_v34 = vld [vmem:[#allocation5 + $0x38] sm:$0xff] }
  0x40   :  { %719 = vmatpush3.msra.mxu1 %v133_v19  ;;  %682 = vmatprep.subr.mxu0 %v116_v20  ;;  %v129_v35 = vld [vmem:[#allocation5 + $0x138] sm:$0xff]  ;;  %v112_v36 = vld [vmem:[#allocation5 + $0xb0] sm:$0xff]  ;;  %v111_v40 = vld [vmem:[#allocation5 + $0xa8] sm:$0xff] }
  0x41   :  { %720 = vmatprep.subr.mxu1 %v148_v21  ;;  %683 = vmatpush3.msra.mxu0 %v100_v22  ;;  %v144_v37 = vld [vmem:[#allocation5 + $0x1b0] sm:$0xff]  ;;  %v143_v41 = vld [vmem:[#allocation5 + $0x1a8] sm:$0xff]  ;;  %v110_v44 = vld [vmem:[#allocation5 + $0xa0] sm:$0xff] }
  0x42   :  { %721 = vmatpush3.msra.mxu1 %v132_v23  ;;  %684 = vmatprep.subr.mxu0 %v115_v24  ;;  %v96_v38 = vld [vmem:[#allocation5 + $0x30] sm:$0xff]  ;;  %v95_v42 = vld [vmem:[#allocation5 + $0x28] sm:$0xff]  ;;  %v142_v45 = vld [vmem:[#allocation5 + $0x1a0] sm:$0xff] }
  0x43   :  { %722 = vmatprep.subr.mxu1 %v147_v25  ;;  %685 = vmatpush3.msra.mxu0 %v99_v26  ;;  %v128_v39 = vld [vmem:[#allocation5 + $0x130] sm:$0xff]  ;;  %v127_v43 = vld [vmem:[#allocation5 + $0x128] sm:$0xff]  ;;  %v94_v46 = vld [vmem:[#allocation5 + $0x20] sm:$0xff] }
  0x44   :  { %723 = vmatpush3.msra.mxu1 %v131_v27  ;;  %686 = vmatprep.subr.mxu0 %v114_v28  ;;  %v126_v47 = vld [vmem:[#allocation5 + $0x120] sm:$0xff]  ;;  %v109_v48 = vld [vmem:[#allocation5 + $0x98] sm:$0xff]  ;;  %v108_v52 = vld [vmem:[#allocation5 + $0x90] sm:$0xff] }
  0x45   :  { %724 = vmatprep.subr.mxu1 %v146_v29  ;;  %687 = vmatpush3.msra.mxu0 %v98_v30  ;;  %v141_v49 = vld [vmem:[#allocation5 + $0x198] sm:$0xff]  ;;  %v140_v53 = vld [vmem:[#allocation5 + $0x190] sm:$0xff]  ;;  %v107_v56 = vld [vmem:[#allocation5 + $0x88] sm:$0xff] }
  0x46   :  { %725 = vmatpush3.msra.mxu1 %v130_v31  ;;  %688 = vmatprep.subr.mxu0 %v113_v32  ;;  %v93_v50 = vld [vmem:[#allocation5 + $0x18] sm:$0xff]  ;;  %v92_v54 = vld [vmem:[#allocation5 + $0x10] sm:$0xff]  ;;  %v139_v57 = vld [vmem:[#allocation5 + $0x188] sm:$0xff] }
  0x47   :  { %726 = vmatprep.subr.mxu1 %v145_v33  ;;  %689 = vmatpush3.msra.mxu0 %v97_v34  ;;  %v125_v51 = vld [vmem:[#allocation5 + $0x118] sm:$0xff]  ;;  %v124_v55 = vld [vmem:[#allocation5 + $0x110] sm:$0xff]  ;;  %v91_v58 = vld [vmem:[#allocation5 + $0x8] sm:$0xff] }
  0x48   :  { %727 = vmatpush3.msra.mxu1 %v129_v35  ;;  %690 = vmatprep.subr.mxu0 %v112_v36  ;;  %v123_v59 = vld [vmem:[#allocation5 + $0x108] sm:$0xff]  ;;  %v106_v60 = vld [vmem:[#allocation5 + $0x80] sm:$0xff]  ;;  %v1080_v2 = vld [vmem:[#allocation2 + $0x18] sm:$0xff] }
  0x49   :  { %728 = vmatprep.subr.mxu1 %v144_v37  ;;  %691 = vmatpush3.msra.mxu0 %v96_v38  ;;  %v138_v61 = vld [vmem:[#allocation5 + $0x180] sm:$0xff]  ;;  %v1076_v63 = vld [vmem:[#allocation2 + $0x8] sm:$0xff]  ;;  %v342_v3 = vld [vmem:[#allocation7 + $0xf8] sm:$0xff] }
  0x4a   :  { %729 = vmatpush3.msra.mxu1 %v128_v39  ;;  %692 = vmatprep.subr.mxu0 %v111_v40  ;;  %v90_v62 = vld [vmem:[#allocation5] sm:$0xff]  ;;  %v374_v4 = vld [vmem:[#allocation7 + $0x1f8] sm:$0xff]  ;;  %v1083_v5 = vld [vmem:[#allocation2 + $0x10] sm:$0xff] }
  0x4b   :  { %730 = vmatprep.subr.mxu1 %v143_v41  ;;  %693 = vmatpush3.msra.mxu0 %v95_v42  ;;  %v122_v0 = vld [vmem:[#allocation5 + $0x100] sm:$0xff]  ;;  %v326_v6 = vld [vmem:[#allocation7 + $0x78] sm:$0xff]  ;;  %v341_v8 = vld [vmem:[#allocation7 + $0xf0] sm:$0xff] }
  0x4c   :  { %731 = vmatpush3.msra.mxu1 %v127_v43  ;;  %694 = vmatprep.subr.mxu0 %v110_v44  ;;  %v1078_v1 = vld [vmem:[#allocation2] sm:$0xff]  ;;  %v358_v7 = vld [vmem:[#allocation7 + $0x178] sm:$0xff]  ;;  %v373_v9 = vld [vmem:[#allocation7 + $0x1f0] sm:$0xff] }
  0x4d   :  { %732 = vmatprep.subr.mxu1 %v142_v45  ;;  %695 = vmatpush3.msra.mxu0 %v94_v46  ;;  %v325_v10 = vld [vmem:[#allocation7 + $0x70] sm:$0xff]  ;;  %v340_v12 = vld [vmem:[#allocation7 + $0xe8] sm:$0xff]  ;;  %v339_v16 = vld [vmem:[#allocation7 + $0xe0] sm:$0xff] }
  0x4e   :  { %733 = vmatpush3.msra.mxu1 %v126_v47  ;;  %696 = vmatprep.subr.mxu0 %v109_v48  ;;  %v357_v11 = vld [vmem:[#allocation7 + $0x170] sm:$0xff]  ;;  %v372_v13 = vld [vmem:[#allocation7 + $0x1e8] sm:$0xff]  ;;  %v371_v17 = vld [vmem:[#allocation7 + $0x1e0] sm:$0xff] }
  0x4f   :  { %734 = vmatprep.subr.mxu1 %v141_v49  ;;  %697 = vmatpush3.msra.mxu0 %v93_v50  ;;  %v324_v14 = vld [vmem:[#allocation7 + $0x68] sm:$0xff]  ;;  %v323_v18 = vld [vmem:[#allocation7 + $0x60] sm:$0xff]  ;;  %v338_v20 = vld [vmem:[#allocation7 + $0xd8] sm:$0xff] }
  0x50   :  { %735 = vmatpush3.msra.mxu1 %v125_v51  ;;  %698 = vmatprep.subr.mxu0 %v108_v52  ;;  %v356_v15 = vld [vmem:[#allocation7 + $0x168] sm:$0xff]  ;;  %v355_v19 = vld [vmem:[#allocation7 + $0x160] sm:$0xff]  ;;  %v370_v21 = vld [vmem:[#allocation7 + $0x1d8] sm:$0xff] }
  0x51   :  { %736 = vmatprep.subr.mxu1 %v140_v53  ;;  %699 = vmatpush3.msra.mxu0 %v92_v54  ;;  %v322_v22 = vld [vmem:[#allocation7 + $0x58] sm:$0xff]  ;;  %v337_v24 = vld [vmem:[#allocation7 + $0xd0] sm:$0xff]  ;;  %v336_v28 = vld [vmem:[#allocation7 + $0xc8] sm:$0xff] }
  0x52   :  { %737 = vmatpush3.msra.mxu1 %v124_v55  ;;  %700 = vmatprep.subr.mxu0 %v107_v56  ;;  %v354_v23 = vld [vmem:[#allocation7 + $0x158] sm:$0xff]  ;;  %v369_v25 = vld [vmem:[#allocation7 + $0x1d0] sm:$0xff]  ;;  %v368_v29 = vld [vmem:[#allocation7 + $0x1c8] sm:$0xff] }
  0x53   :  { %738 = vmatprep.subr.mxu1 %v139_v57  ;;  %701 = vmatpush3.msra.mxu0 %v91_v58  ;;  %v321_v26 = vld [vmem:[#allocation7 + $0x50] sm:$0xff]  ;;  %v320_v30 = vld [vmem:[#allocation7 + $0x48] sm:$0xff]  ;;  %v335_v32 = vld [vmem:[#allocation7 + $0xc0] sm:$0xff] }
  0x54   :  { %739 = vmatpush3.msra.mxu1 %v123_v59  ;;  %702 = vmatprep.subr.mxu0 %v106_v60  ;;  %v353_v27 = vld [vmem:[#allocation7 + $0x150] sm:$0xff]  ;;  %v352_v31 = vld [vmem:[#allocation7 + $0x148] sm:$0xff]  ;;  %v367_v33 = vld [vmem:[#allocation7 + $0x1c0] sm:$0xff] }
  0x55   :  { %740 = vmatprep.subr.mxu1 %v138_v61  ;;  %703 = vmatpush3.msra.mxu0 %v90_v62  ;;  %v319_v34 = vld [vmem:[#allocation7 + $0x40] sm:$0xff]  ;;  %v334_v36 = vld [vmem:[#allocation7 + $0xb8] sm:$0xff]  ;;  %v333_v40 = vld [vmem:[#allocation7 + $0xb0] sm:$0xff] }
  0x56   :  { %225 = vmatprep.mubr.f32.mxu0 %v1076_v63  ;;  %741 = vmatpush3.msra.mxu1 %v122_v0  ;;  %v351_v35 = vld [vmem:[#allocation7 + $0x140] sm:$0xff]  ;;  %v366_v37 = vld [vmem:[#allocation7 + $0x1b8] sm:$0xff]  ;;  %v365_v41 = vld [vmem:[#allocation7 + $0x1b0] sm:$0xff] }
  0x57   :  { %226 = vmatmul.mubr.f32.vlgmr.msra.gmra.mxu0 %v1078_v1  ;;  %300 = vmatprep.mubr.f32.mxu1 %v1080_v2  ;;  %v318_v38 = vld [vmem:[#allocation7 + $0x38] sm:$0xff]  ;;  %v317_v42 = vld [vmem:[#allocation7 + $0x30] sm:$0xff]  ;;  %v332_v44 = vld [vmem:[#allocation7 + $0xa8] sm:$0xff] }
  0x58   :  { %748 = vmatprep.subr.mxu0 %v342_v3  ;;  %786 = vmatprep.subr.mxu1 %v374_v4  ;;  %v350_v39 = vld [vmem:[#allocation7 + $0x138] sm:$0xff]  ;;  %v349_v43 = vld [vmem:[#allocation7 + $0x130] sm:$0xff]  ;;  %v364_v45 = vld [vmem:[#allocation7 + $0x1a8] sm:$0xff] }
  0x59   :  { %301 = vmatmul.mubr.f32.vlgmr.msra.gmra.mxu1 %v1083_v5  ;;  %749 = vmatpush3.msra.mxu0 %v326_v6  ;;  %v316_v46 = vld [vmem:[#allocation7 + $0x28] sm:$0xff]  ;;  %v331_v48 = vld [vmem:[#allocation7 + $0xa0] sm:$0xff]  ;;  %v330_v52 = vld [vmem:[#allocation7 + $0x98] sm:$0xff] }
  0x5a   :  { %787 = vmatpush3.msra.mxu1 %v358_v7  ;;  %750 = vmatprep.subr.mxu0 %v341_v8  ;;  %v348_v47 = vld [vmem:[#allocation7 + $0x128] sm:$0xff]  ;;  %v363_v49 = vld [vmem:[#allocation7 + $0x1a0] sm:$0xff]  ;;  %v362_v53 = vld [vmem:[#allocation7 + $0x198] sm:$0xff] }
  0x5b   :  { %788 = vmatprep.subr.mxu1 %v373_v9  ;;  %751 = vmatpush3.msra.mxu0 %v325_v10  ;;  %v315_v50 = vld [vmem:[#allocation7 + $0x20] sm:$0xff]  ;;  %v87_v54 = vld [vmem:[#allocation2 + $0x28] sm:$0xff]  ;;  %v314_v55 = vld [vmem:[#allocation7 + $0x18] sm:$0xff] }
  0x5c   :  { %789 = vmatpush3.msra.mxu1 %v357_v11  ;;  %752 = vmatprep.subr.mxu0 %v340_v12  ;;  %v347_v51 = vld [vmem:[#allocation7 + $0x120] sm:$0xff]  ;;  %v346_v56 = vld [vmem:[#allocation7 + $0x118] sm:$0xff]  ;;  %v329_v58 = vld [vmem:[#allocation7 + $0x90] sm:$0xff] }
  0x5d   :  { %790 = vmatprep.subr.mxu1 %v372_v13  ;;  %753 = vmatpush3.msra.mxu0 %v324_v14  ;;  %v86_v57 = vld [vmem:[#allocation2 + $0x20] sm:$0xff]  ;;  %v361_v59 = vld [vmem:[#allocation7 + $0x190] sm:$0xff]  ;;  %v89_v60 = vld [vmem:[#allocation2 + $0x38] sm:$0xff] }
  0x5e   :  { %791 = vmatpush3.msra.mxu1 %v356_v15  ;;  %754 = vmatprep.subr.mxu0 %v339_v16  ;;  %v313_v61 = vld [vmem:[#allocation7 + $0x10] sm:$0xff]  ;;  %v328_v0 = vld [vmem:[#allocation7 + $0x88] sm:$0xff]  ;;  %v327_v8 = vld [vmem:[#allocation7 + $0x80] sm:$0xff] }
  0x5f   :  { %792 = vmatprep.subr.mxu1 %v371_v17  ;;  %755 = vmatpush3.msra.mxu0 %v323_v18  ;;  %v345_v62 = vld [vmem:[#allocation7 + $0x110] sm:$0xff]  ;;  %v360_v4 = vld [vmem:[#allocation7 + $0x188] sm:$0xff]  ;;  %v359_v9 = vld [vmem:[#allocation7 + $0x180] sm:$0xff] }
  0x60   :  { %793 = vmatpush3.msra.mxu1 %v355_v19  ;;  %756 = vmatprep.subr.mxu0 %v338_v20  ;;  %v88_v3 = vld [vmem:[#allocation2 + $0x30] sm:$0xff]  ;;  %v312_v6 = vld [vmem:[#allocation7 + $0x8] sm:$0xff]  ;;  %v311_v10 = vld [vmem:[#allocation7] sm:$0xff] }
  0x61   :  { %794 = vmatprep.subr.mxu1 %v370_v21  ;;  %757 = vmatpush3.msra.mxu0 %v322_v22  ;;  %v344_v7 = vld [vmem:[#allocation7 + $0x108] sm:$0xff]  ;;  %v343_v11 = vld [vmem:[#allocation7 + $0x100] sm:$0xff]  ;;  %v563_v12 = vld [vmem:[#allocation8 + $0x78] sm:$0xff] }
  0x62   :  { %795 = vmatpush3.msra.mxu1 %v354_v23  ;;  %758 = vmatprep.subr.mxu0 %v337_v24  ;;  %v562_v13 = vld [vmem:[#allocation8 + $0x70] sm:$0xff]  ;;  %v561_v14 = vld [vmem:[#allocation8 + $0x68] sm:$0xff]  ;;  %v556_v15 = vld [vmem:[#allocation8 + $0x40] sm:$0xff] }
  0x63   :  { %796 = vmatprep.subr.mxu1 %v369_v25  ;;  %759 = vmatpush3.msra.mxu0 %v321_v26  ;;  %v555_v16 = vld [vmem:[#allocation8 + $0x38] sm:$0xff]  ;;  %v554_v17 = vld [vmem:[#allocation8 + $0x30] sm:$0xff]  ;;  %v553_v18 = vld [vmem:[#allocation8 + $0x28] sm:$0xff] }
  0x64   :  { %797 = vmatpush3.msra.mxu1 %v353_v27  ;;  %760 = vmatprep.subr.mxu0 %v336_v28  ;;  %v552_v19 = vld [vmem:[#allocation8 + $0x20] sm:$0xff]  ;;  %v551_v20 = vld [vmem:[#allocation8 + $0x18] sm:$0xff]  ;;  %v550_v21 = vld [vmem:[#allocation8 + $0x10] sm:$0xff] }
  0x65   :  { %798 = vmatprep.subr.mxu1 %v368_v29  ;;  %761 = vmatpush3.msra.mxu0 %v320_v30  ;;  %v549_v22 = vld [vmem:[#allocation8 + $0x8] sm:$0xff]  ;;  %v548_v23 = vld [vmem:[#allocation8] sm:$0xff] }
  0x66   :  { %799 = vmatpush3.msra.mxu1 %v352_v31  ;;  %762 = vmatprep.subr.mxu0 %v335_v32 }
  0x67   :  { %800 = vmatprep.subr.mxu1 %v367_v33  ;;  %763 = vmatpush3.msra.mxu0 %v319_v34  ;;  %v668_v34 = vld [vmem:[%s1111_s4] ss:$0 sm:$0xff] }
  0x68   :  { %801 = vmatpush3.msra.mxu1 %v351_v35  ;;  %764 = vmatprep.subr.mxu0 %v334_v36 }
  0x69   :  { %802 = vmatprep.subr.mxu1 %v366_v37  ;;  %765 = vmatpush3.msra.mxu0 %v318_v38 }
  0x6a   :  { %803 = vmatpush3.msra.mxu1 %v350_v39  ;;  %766 = vmatprep.subr.mxu0 %v333_v40 }
  0x6b   :  { %804 = vmatprep.subr.mxu1 %v365_v41  ;;  %767 = vmatpush3.msra.mxu0 %v317_v42 }
  0x6c   :  { %805 = vmatpush3.msra.mxu1 %v349_v43  ;;  %768 = vmatprep.subr.mxu0 %v332_v44 }
  0x6d   :  { %806 = vmatprep.subr.mxu1 %v364_v45  ;;  %769 = vmatpush3.msra.mxu0 %v316_v46 }
  0x6e   :  { %807 = vmatpush3.msra.mxu1 %v348_v47  ;;  %770 = vmatprep.subr.mxu0 %v331_v48 }
  0x6f   :  { %808 = vmatprep.subr.mxu1 %v363_v49  ;;  %771 = vmatpush3.msra.mxu0 %v315_v50 }
  0x70   :  { %809 = vmatpush3.msra.mxu1 %v347_v51  ;;  %772 = vmatprep.subr.mxu0 %v330_v52  ;;  %v667_v52 = vld [vmem:[%s1109_s2] ss:$0 sm:$0xff] }
  0x71   :  { %810 = vmatprep.subr.mxu1 %v362_v53  ;;  %230 = vmatprep.mubr.f32.mxu0 %v87_v54 }
  0x72   :  { %773 = vmatpush3.msra.mxu0 %v314_v55  ;;  %811 = vmatpush3.msra.mxu1 %v346_v56 }
  0x73   :  { %231 = vmatmul.mubr.f32.gmra.mxu0 %v86_v57  ;;  %774 = vmatprep.subr.mxu0 %v329_v58 }
  0x74   :  { %812 = vmatprep.subr.mxu1 %v361_v59  ;;  %305 = vmatprep.mubr.f32.mxu1 %v89_v60 }
  0x75   :  { %775 = vmatpush3.msra.mxu0 %v313_v61  ;;  %813 = vmatpush3.msra.mxu1 %v345_v62 }
  0x76   :  { %776 = vmatprep.subr.mxu0 %v328_v0  ;;  %306 = vmatmul.mubr.f32.gmra.mxu1 %v88_v3 }
  0x77   :  { %814 = vmatprep.subr.mxu1 %v360_v4  ;;  %777 = vmatpush3.msra.mxu0 %v312_v6 }
  0x78   :  { %815 = vmatpush3.msra.mxu1 %v344_v7  ;;  %778 = vmatprep.subr.mxu0 %v327_v8 }
  0x79   :  { %816 = vmatprep.subr.mxu1 %v359_v9  ;;  %779 = vmatpush3.msra.mxu0 %v311_v10  ;;  %v671_v10 = vld [vmem:[%s1113_s6] ss:$0 sm:$0xff] }
  0x7a   :  { %446 = vmatprep.mubr.f32.mxu0 %v1076_v63  ;;  %817 = vmatpush3.msra.mxu1 %v343_v11  ;;  %v560_v63 = vld [vmem:[#allocation8 + $0x60] sm:$0xff] }
  0x7b   :  { %521 = vmatprep.mubr.f32.mxu1 %v1080_v2  ;;  %447 = vmatmul.mubr.f32.vlgmr.msra.gmra.mxu0 %v1078_v1  ;;  %v559_v2 = vld [vmem:[#allocation8 + $0x58] sm:$0xff]  ;;  %v558_v1 = vld [vmem:[#allocation8 + $0x50] sm:$0xff] }
  0x7c   :  { %522 = vmatmul.mubr.f32.vlgmr.msra.gmra.mxu1 %v1083_v5  ;;  %451 = vmatprep.mubr.f32.mxu0 %v87_v54  ;;  %v557_v5 = vld [vmem:[#allocation8 + $0x48] sm:$0xff] }
  0x7d   :  { %526 = vmatprep.mubr.f32.mxu1 %v89_v60  ;;  %842 = vmatprep.subr.mxu0 %v563_v12 }
  0x7e   :  { %843 = vmatpush3.msra.mxu0 %v563_v12 }
  0x7f   :  { %452 = vmatmul.mubr.f32.gmra.mxu0 %v86_v57  ;;  %844 = vmatprep.subr.mxu0 %v562_v13 }
  0x80   :  { %527 = vmatmul.mubr.f32.gmra.mxu1 %v88_v3  ;;  %845 = vmatpush3.msra.mxu0 %v562_v13 }
  0x81   :  { %846 = vmatprep.subr.mxu0 %v561_v14 }
  0x82   :  { %847 = vmatpush3.msra.mxu0 %v561_v14 }
  0x83   :  { %848 = vmatprep.subr.mxu0 %v560_v63 }
  0x84   :  { %849 = vmatpush3.msra.mxu0 %v560_v63 }
  0x85   :  { %850 = vmatprep.subr.mxu0 %v559_v2 }
  0x86   :  { %851 = vmatpush3.msra.mxu0 %v559_v2 }
  0x87   :  { %852 = vmatprep.subr.mxu0 %v558_v1 }
  0x88   :  { %853 = vmatpush3.msra.mxu0 %v558_v1 }
  0x89   :  { %854 = vmatprep.subr.mxu0 %v557_v5 }
  0x8a   :  { %855 = vmatpush3.msra.mxu0 %v557_v5 }
  0x8b   :  { %856 = vmatprep.subr.mxu0 %v556_v15 }
  0x8c   :  { %857 = vmatpush3.msra.mxu0 %v556_v15 }
  0x8d   :  { %858 = vmatprep.subr.mxu0 %v555_v16 }
  0x8e   :  { %859 = vmatpush3.msra.mxu0 %v555_v16 }
  0x8f   :  { %860 = vmatprep.subr.mxu0 %v554_v17 }
  0x90   :  { %861 = vmatpush3.msra.mxu0 %v554_v17 }
  0x91   :  { %862 = vmatprep.subr.mxu0 %v553_v18 }
  0x92   :  { %863 = vmatpush3.msra.mxu0 %v553_v18 }
  0x93   :  { %864 = vmatprep.subr.mxu0 %v552_v19 }
  0x94   :  { %865 = vmatpush3.msra.mxu0 %v552_v19 }
  0x95   :  { %866 = vmatprep.subr.mxu0 %v551_v20 }
  0x96   :  { %867 = vmatpush3.msra.mxu0 %v551_v20 }
  0x97   :  { %868 = vmatprep.subr.mxu0 %v550_v21 }
  0x98   :  { %869 = vmatpush3.msra.mxu0 %v550_v21 }
  0x99   :  { %870 = vmatprep.subr.mxu0 %v549_v22 }
  0x9a   :  { %871 = vmatpush3.msra.mxu0 %v549_v22 }
  0x9b   :  { %872 = vmatprep.subr.mxu0 %v548_v23 }
  0x9c   :  { %873 = vmatpush3.msra.mxu0 %v548_v23 }
 0x117   :  { %v704_v24 = vpop.f32.mrf.mxu0 }
 0x119   :  { %v742_v25 = vpop.f32.mrf.mxu1  ;;  %v705_v26 = vpop.f32.mrf.mxu0 }
 0x11a   :  { %v706_v51 = vadd.f32 %v705_v26, %v704_v24 }
 0x11b   :  { %v743_v27 = vpop.f32.mrf.mxu1 }
 0x11c   :  { %v228_v53 = vadd.f32 %v706_v51, %v667_v52  ;;  %v744_v54 = vadd.f32 %v743_v27, %v742_v25 }
 0x11e   :  { %v303_v56 = vadd.f32 %v744_v54, %v228_v53 }
 0x133   :  { %v707_v28 = vpop.f32.mrf.mxu0 }
 0x135   :  { %v708_v31 = vpop.f32.mrf.mxu0 }
 0x136   :  { %v745_v29 = vpop.f32.mrf.mxu1  ;;  %v709_v55 = vadd.f32 %v708_v31, %v707_v28 }
 0x138   :  { %v746_v30 = vpop.f32.mrf.mxu1  ;;  %v233_v57 = vadd.f32 %v709_v55, %v667_v52 }
 0x139   :  { %v747_v58 = vadd.f32 %v746_v30, %v745_v29 }
 0x13b   :  { %v780_v32 = vpop.f32.mrf.mxu0  ;;  %v308_v61 = vadd.f32 %v747_v58, %v233_v57 }
 0x13c   :  { %v818_v33 = vpop.f32.mrf.mxu1 }
 0x13d   :  { %v781_v35 = vpop.f32.mrf.mxu0 }
 0x13e   :  { %v819_v36 = vpop.f32.mrf.mxu1  ;;  %v782_v37 = vadd.f32 %v781_v35, %v780_v32 }
 0x13f   :  { %v783_v38 = vpop.f32.mrf.mxu0  ;;  %v820_v41 = vadd.f32 %v819_v36, %v818_v33 }
 0x140   :  { %v821_v39 = vpop.f32.mrf.mxu1  ;;  %v449_v40 = vadd.f32 %v782_v37, %v668_v34 }
 0x141   :  { %v784_v42 = vpop.f32.mrf.mxu0 }
 0x142   :  { %v822_v43 = vpop.f32.mrf.mxu1  ;;  %v524_v44 = vadd.f32 %v820_v41, %v449_v40  ;;  %v785_v45 = vadd.f32 %v784_v42, %v783_v38 }
 0x143   :  { %v823_v48 = vadd.f32 %v822_v43, %v821_v39 }
 0x144   :  { %v669_v46 = vmul.f32 -1.442695, %v524_v44  ;;  %v454_v47 = vadd.f32 %v785_v45, %v668_v34 }
 0x146   :  { %886 = vpow2.f32 %v669_v46  ;;  %v529_v49 = vadd.f32 %v823_v48, %v454_v47 }
 0x148   :  { %v670_v50 = vmul.f32 -1.442695, %v529_v49 }
 0x14a   :  { %888 = vpow2.f32 %v670_v50 }
 0x14b   :  { %890 = vtanh.f32 %v303_v56 }
 0x153   :  { %v887_v59 = vpop.eup %886 }
 0x154   :  { %v540_v60 = vadd.f32 1.0, %v887_v59 }
 0x156   :  { %892 = vrcp.f32 %v540_v60 }
 0x157   :  { %v889_v62 = vpop.eup %888  ;;  %894 = vtanh.f32 %v308_v61 }
 0x158   :  { %v541_v0 = vadd.f32 1.0, %v889_v62  ;;  %v891_v3 = vpop.eup %890 }
 0x15a   :  { %896 = vrcp.f32 %v541_v0 }
 0x163   :  { %v893_v4 = vpop.eup %892 }
 0x164   :  { %v546_v6 = vmul.f32 %v893_v4, %v891_v3  ;;  %v895_v7 = vpop.eup %894 }
 0x166   :  { %874 = vmatprep.mubr.f32.mxu0 %v546_v6 }
 0x167   :  { %v897_v8 = vpop.eup %896 }
 0x168   :  { %v547_v9 = vmul.f32 %v897_v8, %v895_v7 }
 0x16a   :  { %875 = vmatmul.mubr.f32.vlgmr.msra.gmra.mxu0 %v547_v9 }
 0x22a   :  { %v876_v11 = vpop.f32.mrf.mxu0 }
 0x22b   :  { %v643_v12 = vadd.f32 %v876_v11, %v671_v10 }
 0x22c   :  { %v637_v13 = vpop.f32.mrf.mxu0 }
 0x22d   :  { %647 = vst [vmem:[#allocation10 + $0x8] sm:$0xff] %v643_v12  ;;  %v638_v14 = vadd.f32 %v671_v10, %v637_v13 }
 0x22f   :  { %646 = vst [vmem:[#allocation10] sm:$0xff] %v638_v14 }
 0x230   :  { %989 = shalt.err (!%p986_p10)
}
 0x231   :  { %659 = dma.vmem_to_hbm [thread:$0]  %s654_s26, 256, %s1114_s7, [#allocation4], %s1007_s27, %s1007_s27, %s1008_s28  }
 0x232   :  { %1004 = dma.done.wait [#allocation4], 256  }
 0x233   :  { %1005 = vsyncadd [#allocation4], 4294967040 }
 0x234   :  { %663 = vsyncpa [#allocation3], 1 }
 0x235   :  { %664 = vsyncpa [#allocation6], 1 }
 0x236   :  { %665 = vsyncpa [#allocation9], 1 }
 0x237   :  { %666 = vsyncpa [#allocation4], 1 }

</bundles_post_ra>
